<compile_context>
chip_gen: v7x
topology: tpu7x:2x2x1
jax: 0.10.0
libtpu: 0.0.40
codegen_flags: <defaults>
</compile_context>

<pallas_src>
import jax
import jax.numpy as jnp
from jax.experimental import pallas as pl
from jax.experimental.pallas import tpu as pltpu


def _round_up(n, m):
    return ((n + m - 1) // m) * m


# ---------------------------------------------------------------------------
# Packed-parameter layout
# ---------------------------------------------------------------------------
def _weight_blocks(in_ch):
    # (name, rows, used_cols); every block is zero-padded to 128 columns and
    # w5 is stored full-width (128) so the last matmul is lane-dense.
    return [
        ("w1", in_ch, 128), ("w2", 128, 64), ("w3", 64, 32),
        ("w4", 32, 32),        # [wa1 | wc1]
        ("w5", 32, 128),       # block-diag([wa2, wc2]) zero-padded to 128 cols
    ]


_BIAS_ROW = {"b1": 0, "b2": 1, "b3": 2, "b4": 3, "b5": 4}
_BIAS_COLS = {"b1": 128, "b2": 64, "b3": 32, "b4": 32, "b5": 128}


def _weight_layout(in_ch):
    """Row layout of the packed (Rw, 128) bf16 weight buffer.

    Row offsets are rounded to multiples of 16 so every in-kernel slice of the
    bf16 buffer starts on a packed-sublane boundary.
    Returns ({name: (row_offset, rows, used_cols)}, total_rows).
    """
    offs, row = {}, 0
    for name, r, c in _weight_blocks(in_ch):
        offs[name] = (row, r, c)
        row += _round_up(r, 16)
    return offs, row


def pack_params(params, in_ch, out_ch):
    """Pack weights (bf16, fused heads) and biases (f32) into two buffers."""
    assert out_ch + 1 <= 128, "packed w5/b5 layout assumes out_ch + 1 <= 128"
    offs, rw = _weight_layout(in_ch)
    nout = out_ch + 1

    w4 = jnp.concatenate([params["wa1"], params["wc1"]], axis=1)        # (32,32)
    w5 = jnp.zeros((32, 128), jnp.float32)
    w5 = w5.at[0:16, 0:out_ch].set(params["wa2"])
    w5 = w5.at[16:32, out_ch:nout].set(params["wc2"])
    b4 = jnp.concatenate([params["ba1"], params["bc1"]], axis=1)        # (1,32)
    b5 = jnp.zeros((1, 128), jnp.float32)
    b5 = b5.at[:, 0:out_ch].set(params["ba2"])
    b5 = b5.at[:, out_ch:nout].set(params["bc2"])

    weights = {"w1": params["w1"], "w2": params["w2"], "w3": params["w3"],
               "w4": w4, "w5": w5}
    biases = {"b1": params["b1"], "b2": params["b2"], "b3": params["b3"],
              "b4": b4, "b5": b5}

    w_packed = jnp.zeros((rw, 128), jnp.bfloat16)
    for name, arr in weights.items():
        r0, _, _ = offs[name]
        w_packed = w_packed.at[r0:r0 + arr.shape[0],
                               0:arr.shape[1]].set(arr.astype(jnp.bfloat16))

    b_packed = jnp.zeros((8, 128), jnp.float32)
    for name, arr in biases.items():
        row = _BIAS_ROW[name]
        b_packed = b_packed.at[row:row + 1,
                               0:arr.shape[1]].set(arr.astype(jnp.float32))
    return w_packed, b_packed


# ---------------------------------------------------------------------------
# Kernel
# ---------------------------------------------------------------------------
def _make_kernel(in_ch):
    offs, _ = _weight_layout(in_ch)

    def kernel(x_ref, w_ref, b_ref, out_ref):
        def layer(h, wname, bname, relu):
            r0, r, c = offs[wname]                       # static -> cheap view
            y = jnp.dot(h, w_ref[r0:r0 + r, 0:c],
                        preferred_element_type=jnp.float32)
            brow = _BIAS_ROW[bname]
            y = y + b_ref[brow:brow + 1, 0:c]            # f32 bias add
            if relu:
                # cast back to bf16 so the next matmul is a bf16 MXU pass
                y = jnp.maximum(y, 0.0).astype(jnp.bfloat16)
            return y

        h = layer(x_ref[...], "w1", "b1", True)          # (tb, 128)
        h = layer(h, "w2", "b2", True)                   # (tb, 64)
        h = layer(h, "w3", "b3", True)                   # (tb, 32)
        h = layer(h, "w4", "b4", True)                   # fused [actor16|critic16]
        # fused block-diagonal head output, lane-dense (tb, 128) f32 store
        out_ref[...] = layer(h, "w5", "b5", False)

    return kernel


# ---------------------------------------------------------------------------
# Wrapper
# ---------------------------------------------------------------------------
def _choose_tb(B, tb):
    # Small batches: a single tile (4 steps of 64-row work would be pure
    # per-step overhead).  Large batches: cap at ceil(B/2) so there are at
    # least 2 "parallel" grid steps for v7x's two TensorCores.
    tb = min(tb, _round_up(B, 16))
    if B >= 1024:
        tb = min(tb, _round_up(pl.cdiv(B, 2), 16))
    return max(16, _round_up(tb, 16))


def actor_critic_forward(x, params, *, tb=2048):
    """Fused ActorCritic forward. Returns (actor [B, out], critic [B, 1])."""
    B, in_ch = x.shape
    out_ch = params["wa2"].shape[1]

    w_packed, b_packed = pack_params(params, in_ch, out_ch)
    rw = w_packed.shape[0]

    tb = _choose_tb(B, tb)
    grid_n = pl.cdiv(B, tb)
    b_pad = grid_n * tb
    if b_pad != B:
        # Padded tail rows produce relu(bias)-derived garbage; they are sliced
        # off below and nothing in the kernel reduces over the batch axis.
        x = jnp.pad(x, ((0, b_pad - B), (0, 0)))
    x = x.astype(jnp.bfloat16)

    kernel = _make_kernel(in_ch)

    out = pl.pallas_call(
        kernel,
        out_shape=jax.ShapeDtypeStruct((b_pad, 128), jnp.float32),
        grid=(grid_n,),
        in_specs=[
            # batch-tiled input (pipelined across the grid)
            pl.BlockSpec((tb, in_ch), lambda i: (i, 0)),
            # packed weights / biases: constant block index -> DMA'd once,
            # VMEM-resident for the whole grid
            pl.BlockSpec((rw, 128), lambda i: (0, 0)),
            pl.BlockSpec((8, 128), lambda i: (0, 0)),
        ],
        out_specs=pl.BlockSpec((tb, 128), lambda i: (i, 0)),
        compiler_params=pltpu.CompilerParams(
            # batch axis is embarrassingly parallel -> shard across TCs on v7x
            dimension_semantics=("parallel",)),
    )(x, w_packed, b_packed)

    actor = out[:B, :out_ch]
    critic = out[:B, out_ch:out_ch + 1]
    return actor, critic


# ---------------------------------------------------------------------------
# Init + pure-JAX reference
# ---------------------------------------------------------------------------
def init_params(key, in_channels, out_channels):
    """PyTorch-style uniform(-1/sqrt(fan_in), 1/sqrt(fan_in)) init.

    Weights stored as (in, out); biases as (1, out).
    """
    dims = [
        ("w1", in_channels, 128), ("w2", 128, 64), ("w3", 64, 32),
        ("wa1", 32, 16), ("wa2", 16, out_channels),
        ("wc1", 32, 16), ("wc2", 16, 1),
    ]
    params = {}
    for name, fan_in, fan_out in dims:
        key, kw, kb = jax.random.split(key, 3)
        bound = 1.0 / jnp.sqrt(jnp.float32(fan_in))
        params[name] = jax.random.uniform(
            kw, (fan_in, fan_out), jnp.float32, minval=-bound, maxval=bound)
        params["b" + name[1:]] = jax.random.uniform(
            kb, (1, fan_out), jnp.float32, minval=-bound, maxval=bound)
    return params


def actor_critic_ref(x, p):
    """Pure-JAX f32 reference (unfused) for correctness checking."""
    h = jnp.maximum(x @ p["w1"] + p["b1"], 0.0)
    h = jnp.maximum(h @ p["w2"] + p["b2"], 0.0)
    h = jnp.maximum(h @ p["w3"] + p["b3"], 0.0)
    a = jnp.maximum(h @ p["wa1"] + p["ba1"], 0.0)
    actor = a @ p["wa2"] + p["ba2"]
    c = jnp.maximum(h @ p["wc1"] + p["bc1"], 0.0)
    critic = c @ p["wc2"] + p["bc2"]
    return actor, critic


if __name__ == "__main__":
    key = jax.random.PRNGKey(0)
    key, kx = jax.random.split(key)

    # CartPole-like: 4 obs features, 2 actions.
    B, IN_CH, OUT_CH = 200, 4, 2
    x = jax.random.normal(kx, (B, IN_CH), jnp.float32)
    params = init_params(key, IN_CH, OUT_CH)

    # Small batch -> single-tile grid=(1,) path.
    actor, critic = actor_critic_forward(x, params)
    actor, critic = jax.block_until_ready((actor, critic))
    actor_r, critic_r = actor_critic_ref(x, params)
    assert actor.shape == (B, OUT_CH) and critic.shape == (B, 1)
    # bf16 operands (f32 accumulation) -> loosened tolerance vs f32 reference.
    assert jnp.allclose(actor, actor_r, atol=3e-2, rtol=3e-2)
    assert jnp.allclose(critic, critic_r, atol=3e-2, rtol=3e-2)

    # Larger batch -> multi-step batch-parallel grid path (2 steps of 2048).
    B2 = 4096
    key, kx2 = jax.random.split(key)
    x2 = jax.random.normal(kx2, (B2, IN_CH), jnp.float32)
    a2, c2 = jax.block_until_ready(actor_critic_forward(x2, params))
    a2_r, c2_r = actor_critic_ref(x2, params)
    assert a2.shape == (B2, OUT_CH) and c2.shape == (B2, 1)
    assert jnp.allclose(a2, a2_r, atol=3e-2, rtol=3e-2)
    assert jnp.allclose(c2, c2_r, atol=3e-2, rtol=3e-2)

    print("KERNEL_OK")
</pallas_src>

<mosaic_0001>
module attributes {stable_mosaic.version = 11 : i64} {
  func.func @kernel(%arg0: i32, %arg1: memref<208x4xbf16, #tpu.memory_space<vmem>>, %arg2: memref<272x128xbf16, #tpu.memory_space<vmem>>, %arg3: memref<8x128xf32, #tpu.memory_space<vmem>>, %arg4: memref<208x128xf32, #tpu.memory_space<vmem>>) attributes {dimension_semantics = [#tpu.dimension_semantics<parallel>], iteration_bounds = array<i64: 1>, scalar_prefetch = 0 : i64, scratch_operands = 0 : i64, tpu.core_type = #tpu.core_type<tc>, window_params = [{transform_indices = @transform_0, window_bounds = array<i64: 208, 4>}, {pipeline_mode = #tpu.pipeline_mode<synchronous>, transform_indices = @transform_1, window_bounds = array<i64: 272, 128>}, {pipeline_mode = #tpu.pipeline_mode<synchronous>, transform_indices = @transform_2, window_bounds = array<i64: 8, 128>}, {transform_indices = @transform_3, window_bounds = array<i64: 208, 128>}]} {
    %c0 = arith.constant 0 : index
    %c0_0 = arith.constant 0 : index
    %0 = vector.load %arg1[%c0, %c0_0] : memref<208x4xbf16, #tpu.memory_space<vmem>>, vector<208x4xbf16>
    %c0_1 = arith.constant 0 : index
    %c0_2 = arith.constant 0 : index
    %1 = vector.load %arg2[%c0_1, %c0_2] : memref<272x128xbf16, #tpu.memory_space<vmem>>, vector<4x128xbf16>
    %cst = arith.constant dense<0.000000e+00> : vector<208x128xf32>
    %2 = tpu.matmul %0, %1, %cst {dimension_numbers = #tpu.dot_dimension_numbers<[1], [0], [0], [1], [0, 0, 1, 1], [], []>} : vector<208x4xbf16>, vector<4x128xbf16>, vector<208x128xf32> -> vector<208x128xf32>
    %c0_3 = arith.constant 0 : index
    %c0_4 = arith.constant 0 : index
    %3 = vector.load %arg3[%c0_3, %c0_4] : memref<8x128xf32, #tpu.memory_space<vmem>>, vector<1x128xf32>
    %4 = vector.broadcast %3 : vector<1x128xf32> to vector<208x128xf32>
    %5 = arith.addf %2, %4 : vector<208x128xf32>
    %cst_5 = arith.constant 0.000000e+00 : f32
    %6 = vector.broadcast %cst_5 : f32 to vector<208x128xf32>
    %7 = arith.maximumf %5, %6 : vector<208x128xf32>
    %8 = arith.truncf %7 : vector<208x128xf32> to vector<208x128xbf16>
    %c16 = arith.constant 16 : index
    %c0_6 = arith.constant 0 : index
    %9 = vector.load %arg2[%c16, %c0_6] : memref<272x128xbf16, #tpu.memory_space<vmem>>, vector<128x64xbf16>
    %cst_7 = arith.constant dense<0.000000e+00> : vector<208x64xf32>
    %10 = tpu.matmul %8, %9, %cst_7 {dimension_numbers = #tpu.dot_dimension_numbers<[1], [0], [0], [1], [0, 0, 1, 1], [], []>} : vector<208x128xbf16>, vector<128x64xbf16>, vector<208x64xf32> -> vector<208x64xf32>
    %c1 = arith.constant 1 : index
    %c0_8 = arith.constant 0 : index
    %11 = vector.load %arg3[%c1, %c0_8] : memref<8x128xf32, #tpu.memory_space<vmem>>, vector<1x64xf32>
    %12 = vector.broadcast %11 : vector<1x64xf32> to vector<208x64xf32>
    %13 = arith.addf %10, %12 : vector<208x64xf32>
    %cst_9 = arith.constant 0.000000e+00 : f32
    %14 = vector.broadcast %cst_9 : f32 to vector<208x64xf32>
    %15 = arith.maximumf %13, %14 : vector<208x64xf32>
    %16 = arith.truncf %15 : vector<208x64xf32> to vector<208x64xbf16>
    %c144 = arith.constant 144 : index
    %c0_10 = arith.constant 0 : index
    %17 = vector.load %arg2[%c144, %c0_10] : memref<272x128xbf16, #tpu.memory_space<vmem>>, vector<64x32xbf16>
    %cst_11 = arith.constant dense<0.000000e+00> : vector<208x32xf32>
    %18 = tpu.matmul %16, %17, %cst_11 {dimension_numbers = #tpu.dot_dimension_numbers<[1], [0], [0], [1], [0, 0, 1, 1], [], []>} : vector<208x64xbf16>, vector<64x32xbf16>, vector<208x32xf32> -> vector<208x32xf32>
    %c2 = arith.constant 2 : index
    %c0_12 = arith.constant 0 : index
    %19 = vector.load %arg3[%c2, %c0_12] : memref<8x128xf32, #tpu.memory_space<vmem>>, vector<1x32xf32>
    %20 = vector.broadcast %19 : vector<1x32xf32> to vector<208x32xf32>
    %21 = arith.addf %18, %20 : vector<208x32xf32>
    %cst_13 = arith.constant 0.000000e+00 : f32
    %22 = vector.broadcast %cst_13 : f32 to vector<208x32xf32>
    %23 = arith.maximumf %21, %22 : vector<208x32xf32>
    %24 = arith.truncf %23 : vector<208x32xf32> to vector<208x32xbf16>
    %c208 = arith.constant 208 : index
    %c0_14 = arith.constant 0 : index
    %25 = vector.load %arg2[%c208, %c0_14] : memref<272x128xbf16, #tpu.memory_space<vmem>>, vector<32x32xbf16>
    %cst_15 = arith.constant dense<0.000000e+00> : vector<208x32xf32>
    %26 = tpu.matmul %24, %25, %cst_15 {dimension_numbers = #tpu.dot_dimension_numbers<[1], [0], [0], [1], [0, 0, 1, 1], [], []>} : vector<208x32xbf16>, vector<32x32xbf16>, vector<208x32xf32> -> vector<208x32xf32>
    %c3 = arith.constant 3 : index
    %c0_16 = arith.constant 0 : index
    %27 = vector.load %arg3[%c3, %c0_16] : memref<8x128xf32, #tpu.memory_space<vmem>>, vector<1x32xf32>
    %28 = vector.broadcast %27 : vector<1x32xf32> to vector<208x32xf32>
    %29 = arith.addf %26, %28 : vector<208x32xf32>
    %cst_17 = arith.constant 0.000000e+00 : f32
    %30 = vector.broadcast %cst_17 : f32 to vector<208x32xf32>
    %31 = arith.maximumf %29, %30 : vector<208x32xf32>
    %32 = arith.truncf %31 : vector<208x32xf32> to vector<208x32xbf16>
    %c240 = arith.constant 240 : index
    %c0_18 = arith.constant 0 : index
    %33 = vector.load %arg2[%c240, %c0_18] : memref<272x128xbf16, #tpu.memory_space<vmem>>, vector<32x128xbf16>
    %cst_19 = arith.constant dense<0.000000e+00> : vector<208x128xf32>
    %34 = tpu.matmul %32, %33, %cst_19 {dimension_numbers = #tpu.dot_dimension_numbers<[1], [0], [0], [1], [0, 0, 1, 1], [], []>} : vector<208x32xbf16>, vector<32x128xbf16>, vector<208x128xf32> -> vector<208x128xf32>
    %c4 = arith.constant 4 : index
    %c0_20 = arith.constant 0 : index
    %35 = vector.load %arg3[%c4, %c0_20] : memref<8x128xf32, #tpu.memory_space<vmem>>, vector<1x128xf32>
    %36 = vector.broadcast %35 : vector<1x128xf32> to vector<208x128xf32>
    %37 = arith.addf %34, %36 : vector<208x128xf32>
    %c0_21 = arith.constant 0 : index
    %c0_22 = arith.constant 0 : index
    %38 = vector.load %arg4[%c0_21, %c0_22] : memref<208x128xf32, #tpu.memory_space<vmem>>, vector<208x128xf32>
    tpu.vector_store %arg4[%c0_21, %c0_22], %37 {strides = array<i32>} : memref<208x128xf32, #tpu.memory_space<vmem>>, vector<208x128xf32>,
    return
  }
  func.func @transform_0(%arg0: i32) -> (i32, i32) {
    %c0_i32 = arith.constant 0 : i32
    %c0_i32_0 = arith.constant 0 : i32
    return %arg0, %c0_i32 : i32, i32
  }
  func.func @transform_1(%arg0: i32) -> (i32, i32) {
    %c0_i32 = arith.constant 0 : i32
    %c0_i32_0 = arith.constant 0 : i32
    %c0_i32_1 = arith.constant 0 : i32
    return %c0_i32, %c0_i32_0 : i32, i32
  }
  func.func @transform_2(%arg0: i32) -> (i32, i32) {
    %c0_i32 = arith.constant 0 : i32
    %c0_i32_0 = arith.constant 0 : i32
    %c0_i32_1 = arith.constant 0 : i32
    return %c0_i32, %c0_i32_0 : i32, i32
  }
  func.func @transform_3(%arg0: i32) -> (i32, i32) {
    %c0_i32 = arith.constant 0 : i32
    %c0_i32_0 = arith.constant 0 : i32
    return %arg0, %c0_i32 : i32, i32
  }
}

</mosaic_0001>

<bundles_post_ra>
// kernel: tpu_custom_call.1
= control target key start
LH: loop header
LB: loop body
LE: loop exit
PB: predicated region body
PF: predicated region fallthrough
CT: control target
= control target key end

     0   :  { %8 = vsyncpa [#allocation3], 0  ;;  %s2326_s0 = inlined_call_operand.vmem [shape: bf16[208,4], index: 0, kind: input, shape index: {}]   ;;  %s2327_s1 = inlined_call_operand.hbm [shape: bf16[272,128], index: 1, kind: input, shape index: {}]   ;;  %s2328_s2 = inlined_call_operand.vmem [shape: f32[8,128], index: 2, kind: input, shape index: {}]   ;;  %s2329_s3 = inlined_call_operand.hbm [shape: f32[208,128], index: 3, kind: output, shape index: {}]  }
   0x1   :  { %9 = vsyncpa [#allocation4], 0  ;;  %s1871_s12 = smov [#allocation2]   ;;  %s1823_s16 = scalar_lea.hbm %s2327_s1, 2176 }
   0x2   :  { %s17_s13 = sshll.u32 %s1871_s12, 4  ;;  %p1824_p0 = scmp.ne.s32.totalorder %s2327_s1, %s1823_s16  ;;  %s18_s13 = int_to_ptr.vmem [resolvable:$true] %s17_s13 }
   0x3   :  { %p1827_p1 = scmp.lt.u32.totalorder %s1823_s16, %s2327_s1 }
   0x5   :  { %p1829_p2 = pnand %p1827_p1, %p1824_p0 }
   0x7   :  { %1832 = shalt.err (!%p1829_p2)
}
   0x8   :  { %s1833_s21 = scalar_lea.vmem %s18_s13, 2176  ;;  %p1838_p4 = scmp.lt.s32.totalorder %s18_s13, %s18_s13 }
   0x9   :  { %p1834_p3 = scmp.ne.s32.totalorder %s18_s13, %s1833_s21  ;;  %p1839_p5 = scmp.lt.s32.totalorder %s1833_s21, %s1833_s21 }
   0xb   :  { %p1840_p6 = por %p1839_p5, %p1838_p4 }
   0xd   :  { %p1841_p7 = pnand %p1840_p6, %p1834_p3 }
   0xf   :  { %1844 = shalt.err (!%p1841_p7)
}
  0x10   :  { %s1872_s22 = smov 64   ;;  %s1873_s23 = smov 4  }
  0x11   :  { %23 = dma.hbm_to_vmem [thread:$0]  %s2327_s1, 2176, %s18_s13, [#allocation3], %s1872_s22, %s1872_s22, %s1873_s23  }
  0x12   :  { %1867 = dma.done.wait [#allocation3], 2176  }
  0x13   :  { %1868 = vsyncadd [#allocation3], 4294965120  ;;  %v1874_v0 = vmov 0.0   ;;  %vm1875_vm0 = vmmov 0   ;;  %vm167_vm1 = vcmask 1041408   ;;  %v1794_v3 = vld [vmem:[%s2326_s0] sm:$0xff]  }
  0x14   :  { %1490 = vmatprep.subr.bf16.mxu0 %v1874_v0  ;;  %1492 = vmatprep.mubr.msk.bf16.mxu0 %vm1875_vm0, %v1874_v0  ;;  %v56_v1 = vld [vmem:[#allocation2] sm:$0x3]  ;;  %vm127_vm2 = vcmask 31744   ;;  %v1801_v4 = vld [vmem:[%s2326_s0 + $0x38] sm:$0xff]   ;;  %v1795_v5 = vld [vmem:[%s2326_s0 + $0x8] sm:$0xff]   ;;  %vm629_vm3 = vcmask 523264  }
  0x15   :  { %1784 = vmatprep.subr.bf16.mxu1 %v1874_v0  ;;  %1520 = vmatprep.mubr.msk.bf16.mxu1 %vm1875_vm0, %v1874_v0  ;;  %v169_v2 = vsel %vm167_vm1, %v56_v1, 0  ;;  %v1802_v6 = vld [vmem:[%s2326_s0 + $0x40] sm:$0xff]   ;;  %v1807_v7 = vld [vmem:[#allocation2 + $0x8] sm:$0xff]   ;;  %v1796_v9 = vld [vmem:[%s2326_s0 + $0x10] sm:$0xff]   ;;  %vm866_vm4 = vcmask 261120  }
  0x16   :  { %1491 = vmatpush3.bf16.msra.mxu0 %v169_v2  ;;  %1785 = vmatpush3.bf16.msra.mxu1 %v169_v2  ;;  %v1808_v8 = vld [vmem:[#allocation2 + $0x10] sm:$0xff]   ;;  %v1803_v10 = vld [vmem:[%s2326_s0 + $0x48] sm:$0xff]   ;;  %v1810_v12 = vld [vmem:[#allocation2 + $0x20] sm:$0xff]  }
  0x17   :  { %1544 = vmatprep.subr.bf16.mxu1 %v1874_v0  ;;  %1612 = vmatprep.subr.bf16.mxu0 %v1874_v0  ;;  %v1809_v11 = vld [vmem:[#allocation2 + $0x18] sm:$0xff]   ;;  %v1797_v13 = vld [vmem:[%s2326_s0 + $0x18] sm:$0xff]   ;;  %v1804_v15 = vld [vmem:[%s2326_s0 + $0x50] sm:$0xff]  }
  0x18   :  { %v1811_v14 = vld [vmem:[#allocation2 + $0x28] sm:$0xff]   ;;  %v1812_v16 = vld [vmem:[#allocation2 + $0x30] sm:$0xff]   ;;  %v1813_v18 = vld [vmem:[#allocation2 + $0x38] sm:$0xff]  }
  0x19   :  { %1493 = vmatmul.mubr.msk.bf16.vlgmr.msra.gmra.mrb[0].mxu0 %vm127_vm2, %v1794_v3  ;;  %1521 = vmatmul.mubr.msk.bf16.vlgmr.msra.gmra.mrb[0].mxu1 %vm127_vm2, %v1801_v4  ;;  %v1798_v17 = vld [vmem:[%s2326_s0 + $0x20] sm:$0xff]   ;;  %v1805_v19 = vld [vmem:[%s2326_s0 + $0x58] sm:$0xff]   ;;  %v1799_v20 = vld [vmem:[%s2326_s0 + $0x28] sm:$0xff]  }
  0x1a   :  { %1496 = vmatprep.mubr.msk.bf16.mxu0 %vm1875_vm0, %v1874_v0  ;;  %1524 = vmatprep.mubr.msk.bf16.mxu1 %vm1875_vm0, %v1874_v0  ;;  %v1806_v21 = vld [vmem:[%s2326_s0 + $0x60] sm:$0xff]   ;;  %v1800_v22 = vld [vmem:[%s2326_s0 + $0x30] sm:$0xff]   ;;  %v1815_v24 = vld [vmem:[#allocation2 + $0x48] sm:$0xff]  }
  0x1b   :  { %1545 = vmatpush3.bf16.msra.mxu1 %v1807_v7  ;;  %v1814_v23 = vld [vmem:[#allocation2 + $0x40] sm:$0xff]   ;;  %1613 = vmatpush3.bf16.msra.mxu0 %v1815_v24  ;;  %v1816_v25 = vld [vmem:[#allocation2 + $0x50] sm:$0xff]   ;;  %v1817_v26 = vld [vmem:[#allocation2 + $0x58] sm:$0xff]  }
  0x1c   :  { %1546 = vmatprep.subr.bf16.mxu1 %v1874_v0  ;;  %1614 = vmatprep.subr.bf16.mxu0 %v1874_v0  ;;  %v1818_v27 = vld [vmem:[#allocation2 + $0x60] sm:$0xff]   ;;  %v2012_v28 = vld [vmem:[%s2328_s2] ss:$0 sm:$0xff] }
  0x1f   :  { %1547 = vmatpush3.bf16.msra.mxu1 %v1808_v8  ;;  %1615 = vmatpush3.bf16.msra.mxu0 %v1816_v25 }
  0x20   :  { %1548 = vmatprep.subr.bf16.mxu1 %v1874_v0  ;;  %1616 = vmatprep.subr.bf16.mxu0 %v1874_v0 }
  0x21   :  { %1497 = vmatmul.mubr.msk.bf16.gmra.mrb[4].mxu0 %vm127_vm2, %v1795_v5  ;;  %1525 = vmatmul.mubr.msk.bf16.gmra.mrb[4].mxu1 %vm127_vm2, %v1802_v6 }
  0x22   :  { %1500 = vmatprep.mubr.msk.bf16.mxu0 %vm1875_vm0, %v1874_v0  ;;  %1528 = vmatprep.mubr.msk.bf16.mxu1 %vm1875_vm0, %v1874_v0 }
  0x23   :  { %1549 = vmatpush3.bf16.msra.mxu1 %v1809_v11  ;;  %1617 = vmatpush3.bf16.msra.mxu0 %v1817_v26 }
  0x24   :  { %1550 = vmatprep.subr.bf16.mxu1 %v1874_v0  ;;  %1618 = vmatprep.subr.bf16.mxu0 %v1874_v0 }
  0x27   :  { %1551 = vmatpush3.bf16.msra.mxu1 %v1810_v12  ;;  %1619 = vmatpush3.bf16.msra.mxu0 %v1818_v27 }
  0x28   :  { %1552 = vmatprep.subr.bf16.mxu1 %v1874_v0  ;;  %1728 = vmatprep.subr.bf16.mxu0 %v1874_v0 }
  0x29   :  { %1501 = vmatmul.mubr.msk.bf16.gmra.mrb[8].mxu0 %vm127_vm2, %v1796_v9  ;;  %1529 = vmatmul.mubr.msk.bf16.gmra.mrb[8].mxu1 %vm127_vm2, %v1803_v10 }
  0x2a   :  { %1504 = vmatprep.mubr.msk.bf16.mxu0 %vm1875_vm0, %v1874_v0  ;;  %1532 = vmatprep.mubr.msk.bf16.mxu1 %vm1875_vm0, %v1874_v0 }
  0x2b   :  { %1553 = vmatpush3.bf16.msra.mxu1 %v1811_v14 }
  0x2c   :  { %1554 = vmatprep.subr.bf16.mxu1 %v1874_v0 }
  0x2f   :  { %1555 = vmatpush3.bf16.msra.mxu1 %v1812_v16 }
  0x30   :  { %1556 = vmatprep.subr.bf16.mxu1 %v1874_v0 }
  0x31   :  { %1505 = vmatmul.mubr.msk.bf16.gmra.mrb[12].mxu0 %vm127_vm2, %v1797_v13  ;;  %1533 = vmatmul.mubr.msk.bf16.gmra.mrb[12].mxu1 %vm127_vm2, %v1804_v15 }
  0x32   :  { %1508 = vmatprep.mubr.msk.bf16.mxu0 %vm1875_vm0, %v1874_v0  ;;  %1536 = vmatprep.mubr.msk.bf16.mxu1 %vm1875_vm0, %v1874_v0 }
  0x33   :  { %1557 = vmatpush3.bf16.msra.mxu1 %v1813_v18 }
  0x34   :  { %1558 = vmatprep.subr.bf16.mxu1 %v1874_v0 }
  0x37   :  { %1559 = vmatpush3.bf16.msra.mxu1 %v1814_v23 }
  0x38   :  { %1672 = vmatprep.subr.bf16.mxu1 %v1874_v0 }
  0x39   :  { %1509 = vmatmul.mubr.msk.bf16.gmra.mrb[16].mxu0 %vm127_vm2, %v1798_v17  ;;  %1537 = vmatmul.mubr.msk.bf16.gmra.mrb[16].mxu1 %vm127_vm2, %v1805_v19 }
  0x3a   :  { %1512 = vmatprep.mubr.msk.bf16.mxu0 %vm1875_vm0, %v1874_v0  ;;  %1540 = vmatprep.mubr.msk.bf16.mxu1 %vm1875_vm0, %v1874_v0 }
  0x41   :  { %1513 = vmatmul.mubr.msk.bf16.gmra.mrb[20].mxu0 %vm127_vm2, %v1799_v20  ;;  %1541 = vmatmul.mubr.msk.bf16.gmra.mrb[20].mxu1 %vm127_vm2, %v1806_v21 }
  0x42   :  { %1516 = vmatprep.mubr.msk.bf16.mxu0 %vm1875_vm0, %v1874_v0  ;;  %1560 = vmatprep.mubr.msk.bf16.mxu1 %vm1875_vm0, %v1874_v0 }
  0x49   :  { %1517 = vmatmul.mubr.msk.bf16.gmra.mrb[24].mxu0 %vm127_vm2, %v1800_v22 }
  0x4a   :  { %1620 = vmatprep.mubr.msk.bf16.mxu0 %vm1875_vm0, %v1874_v0 }
  0xec   :  { %v205_v29 = vpop.f32.mrb[0].mxu0  ;;  %v261_v37 = vpop.f32.mrb[0].mxu1 }
  0xed   :  { %v206_v30 = vadd.f32 %v2012_v28, %v205_v29  ;;  %v1494_v31 = vpop.f32.mrb[1].mxu0  ;;  %v262_v38 = vadd.f32 %v2012_v28, %v261_v37  ;;  %v1522_v39 = vpop.f32.mrb[1].mxu1 }
  0xee   :  { %v208_v32 = vpop.f32.mrb[2].mxu0  ;;  %v264_v41 = vpop.f32.mrb[2].mxu1 }
  0xef   :  { %v209_v33 = vadd.f32 %v2012_v28, %v208_v32  ;;  %v1495_v34 = vpop.f32.mrb[3].mxu0  ;;  %v308_v35 = vmax.f32 %v206_v30, 0.0  ;;  %v322_v43 = vmax.f32 %v262_v38, 0.0  ;;  %v265_v44 = vadd.f32 %v2012_v28, %v264_v41  ;;  %v1523_v45 = vpop.f32.mrb[3].mxu1 }
  0xf1   :  { %v309_v36 = vmax.f32 %v209_v33, 0.0  ;;  %v323_v49 = vmax.f32 %v265_v44, 0.0 }
  0xf3   :  { %v334_v40 = vpack.c.bf16 %v309_v36, %v308_v35  ;;  %v2022_v52 = vpack.c.bf16 %v323_v49, %v322_v43 }
  0xf4   :  { %v213_v42 = vpop.f32.mrb[4].mxu0  ;;  %v269_v55 = vpop.f32.mrb[4].mxu1 }
  0xf5   :  { %v214_v46 = vadd.f32 %v2012_v28, %v213_v42  ;;  %v1498_v47 = vpop.f32.mrb[5].mxu0  ;;  %1561 = vmatmul.mubr.bf16.vlgmr.msra.gmra.mrb[24].mxu1 %v334_v40  ;;  %v270_v56 = vadd.f32 %v2012_v28, %v269_v55  ;;  %v1526_v57 = vpop.f32.mrb[5].mxu1 }
  0xf6   :  { %v216_v48 = vpop.f32.mrb[6].mxu0  ;;  %1564 = vmatprep.mubr.msk.bf16.mxu1 %vm1875_vm0, %v1874_v0  ;;  %v272_v59 = vpop.f32.mrb[6].mxu1 }
  0xf7   :  { %v217_v50 = vadd.f32 %v2012_v28, %v216_v48  ;;  %v1499_v51 = vpop.f32.mrb[7].mxu0  ;;  %v310_v53 = vmax.f32 %v214_v46, 0.0  ;;  %v324_v61 = vmax.f32 %v270_v56, 0.0  ;;  %v273_v62 = vadd.f32 %v2012_v28, %v272_v59  ;;  %v1527_v63 = vpop.f32.mrb[7].mxu1 }
  0xf9   :  { %v311_v54 = vmax.f32 %v217_v50, 0.0  ;;  %v325_v4 = vmax.f32 %v273_v62, 0.0 }
  0xfb   :  { %v335_v58 = vpack.c.bf16 %v311_v54, %v310_v53  ;;  %v2030_v7 = vpack.c.bf16 %v325_v4, %v324_v61 }
  0xfc   :  { %v221_v60 = vpop.f32.mrb[8].mxu0  ;;  %v277_v10 = vpop.f32.mrb[8].mxu1 }
  0xfd   :  { %v222_v1 = vadd.f32 %v2012_v28, %v221_v60  ;;  %v1502_v2 = vpop.f32.mrb[9].mxu0  ;;  %1565 = vmatmul.mubr.bf16.gmra.mrb[28].mxu1 %v335_v58  ;;  %v278_v11 = vadd.f32 %v2012_v28, %v277_v10  ;;  %v1530_v12 = vpop.f32.mrb[9].mxu1 }
  0xfe   :  { %v224_v3 = vpop.f32.mrb[10].mxu0  ;;  %1568 = vmatprep.mubr.msk.bf16.mxu1 %vm1875_vm0, %v1874_v0  ;;  %v280_v14 = vpop.f32.mrb[10].mxu1 }
  0xff   :  { %v225_v5 = vadd.f32 %v2012_v28, %v224_v3  ;;  %v1503_v6 = vpop.f32.mrb[11].mxu0  ;;  %v312_v8 = vmax.f32 %v222_v1, 0.0  ;;  %v326_v16 = vmax.f32 %v278_v11, 0.0  ;;  %v281_v17 = vadd.f32 %v2012_v28, %v280_v14  ;;  %v1531_v18 = vpop.f32.mrb[11].mxu1 }
 0x101   :  { %v313_v9 = vmax.f32 %v225_v5, 0.0  ;;  %v327_v22 = vmax.f32 %v281_v17, 0.0 }
 0x103   :  { %v336_v13 = vpack.c.bf16 %v313_v9, %v312_v8  ;;  %v2038_v25 = vpack.c.bf16 %v327_v22, %v326_v16 }
 0x104   :  { %v229_v15 = vpop.f32.mrb[12].mxu0  ;;  %v285_v29 = vpop.f32.mrb[12].mxu1 }
 0x105   :  { %v230_v19 = vadd.f32 %v2012_v28, %v229_v15  ;;  %v1506_v20 = vpop.f32.mrb[13].mxu0  ;;  %1569 = vmatmul.mubr.bf16.gmra.mrb[32].mxu1 %v336_v13  ;;  %v286_v30 = vadd.f32 %v2012_v28, %v285_v29  ;;  %v1534_v31 = vpop.f32.mrb[13].mxu1 }
 0x106   :  { %v232_v21 = vpop.f32.mrb[14].mxu0  ;;  %1572 = vmatprep.mubr.msk.bf16.mxu1 %vm1875_vm0, %v1874_v0  ;;  %v288_v33 = vpop.f32.mrb[14].mxu1 }
 0x107   :  { %v233_v23 = vadd.f32 %v2012_v28, %v232_v21  ;;  %v1507_v24 = vpop.f32.mrb[15].mxu0  ;;  %v314_v26 = vmax.f32 %v230_v19, 0.0  ;;  %v328_v35 = vmax.f32 %v286_v30, 0.0  ;;  %v289_v36 = vadd.f32 %v2012_v28, %v288_v33  ;;  %v1535_v37 = vpop.f32.mrb[15].mxu1 }
 0x109   :  { %v315_v27 = vmax.f32 %v233_v23, 0.0  ;;  %v329_v41 = vmax.f32 %v289_v36, 0.0 }
 0x10b   :  { %v337_v32 = vpack.c.bf16 %v315_v27, %v314_v26  ;;  %v344_v44 = vpack.c.bf16 %v329_v41, %v328_v35 }
 0x10c   :  { %v237_v34 = vpop.f32.mrb[16].mxu0  ;;  %v293_v47 = vpop.f32.mrb[16].mxu1 }
 0x10d   :  { %v238_v38 = vadd.f32 %v2012_v28, %v237_v34  ;;  %v1510_v39 = vpop.f32.mrb[17].mxu0  ;;  %1573 = vmatmul.mubr.bf16.gmra.mrb[36].mxu1 %v337_v32  ;;  %v294_v48 = vadd.f32 %v2012_v28, %v293_v47  ;;  %v1538_v49 = vpop.f32.mrb[17].mxu1 }
 0x10e   :  { %v240_v40 = vpop.f32.mrb[18].mxu0  ;;  %1576 = vmatprep.mubr.msk.bf16.mxu1 %vm1875_vm0, %v1874_v0  ;;  %v296_v51 = vpop.f32.mrb[18].mxu1 }
 0x10f   :  { %v241_v42 = vadd.f32 %v2012_v28, %v240_v40  ;;  %v1511_v43 = vpop.f32.mrb[19].mxu0  ;;  %v316_v45 = vmax.f32 %v238_v38, 0.0  ;;  %v330_v54 = vmax.f32 %v294_v48, 0.0  ;;  %v297_v55 = vadd.f32 %v2012_v28, %v296_v51  ;;  %v1539_v56 = vpop.f32.mrb[19].mxu1 }
 0x111   :  { %v317_v46 = vmax.f32 %v241_v42, 0.0  ;;  %v331_v60 = vmax.f32 %v297_v55, 0.0 }
 0x113   :  { %v338_v50 = vpack.c.bf16 %v317_v46, %v316_v45  ;;  %v345_v63 = vpack.c.bf16 %v331_v60, %v330_v54 }
 0x114   :  { %v245_v53 = vpop.f32.mrb[20].mxu0  ;;  %v301_v3 = vpop.f32.mrb[20].mxu1 }
 0x115   :  { %v246_v57 = vadd.f32 %v2012_v28, %v245_v53  ;;  %v1514_v58 = vpop.f32.mrb[21].mxu0  ;;  %1577 = vmatmul.mubr.bf16.gmra.mrb[40].mxu1 %v338_v50  ;;  %v302_v4 = vadd.f32 %v2012_v28, %v301_v3  ;;  %v1542_v5 = vpop.f32.mrb[21].mxu1 }
 0x116   :  { %v248_v59 = vpop.f32.mrb[22].mxu0  ;;  %1580 = vmatprep.mubr.msk.bf16.mxu1 %vm1875_vm0, %v1874_v0  ;;  %v304_v8 = vpop.f32.mrb[22].mxu1 }
 0x117   :  { %v249_v61 = vadd.f32 %v2012_v28, %v248_v59  ;;  %v1515_v62 = vpop.f32.mrb[23].mxu0  ;;  %v318_v1 = vmax.f32 %v246_v57, 0.0  ;;  %v332_v10 = vmax.f32 %v302_v4, 0.0  ;;  %v305_v11 = vadd.f32 %v2012_v28, %v304_v8  ;;  %v1543_v12 = vpop.f32.mrb[23].mxu1 }
 0x119   :  { %v319_v2 = vmax.f32 %v249_v61, 0.0  ;;  %v333_v16 = vmax.f32 %v305_v11, 0.0 }
 0x11b   :  { %v339_v6 = vpack.c.bf16 %v319_v2, %v318_v1  ;;  %v346_v19 = vpack.c.bf16 %v333_v16, %v332_v10 }
 0x11c   :  { %v253_v9 = vpop.f32.mrb[24].mxu0 }
 0x11d   :  { %v254_v13 = vadd.f32 %v2012_v28, %v253_v9  ;;  %v1518_v14 = vpop.f32.mrb[25].mxu0  ;;  %1581 = vmatmul.mubr.bf16.gmra.mrb[44].mxu1 %v339_v6 }
 0x11e   :  { %v256_v15 = vpop.f32.mrb[26].mxu0  ;;  %1584 = vmatprep.mubr.msk.bf16.mxu1 %vm1875_vm0, %v1874_v0 }
 0x11f   :  { %v257_v17 = vadd.f32 %v2012_v28, %v256_v15  ;;  %v1519_v18 = vpop.f32.mrb[27].mxu0  ;;  %v320_v20 = vmax.f32 %v254_v13, 0.0  ;;  %v1819_v28 = vld [vmem:[#allocation2 + $0x68] sm:$0xff]  }
 0x120   :  { %1673 = vmatpush3.bf16.msra.mxu1 %v1819_v28 }
 0x121   :  { %v321_v21 = vmax.f32 %v257_v17, 0.0  ;;  %1674 = vmatprep.subr.bf16.mxu1 %v1874_v0 }
 0x123   :  { %v340_v22 = vpack.c.bf16 %v321_v21, %v320_v20 }
 0x125   :  { %1585 = vmatmul.mubr.bf16.gmra.mrb[48].mxu1 %v340_v22 }
 0x126   :  { %1588 = vmatprep.mubr.msk.bf16.mxu1 %vm1875_vm0, %v1874_v0 }
 0x12d   :  { %1589 = vmatmul.mubr.bf16.gmra.mrb[52].mxu1 %v2022_v52  ;;  %v1820_v52 = vld [vmem:[#allocation2 + $0x70] sm:$0xff]  }
 0x12e   :  { %1592 = vmatprep.mubr.msk.bf16.mxu1 %vm1875_vm0, %v1874_v0  ;;  %1675 = vmatpush3.bf16.msra.mxu1 %v1820_v52 }
 0x135   :  { %1593 = vmatmul.mubr.bf16.gmra.mrb[56].mxu1 %v2030_v7  ;;  %v2079_v7 = vld [vmem:[%s2328_s2 + $0x1] ss:$0 sm:$0xff] }
 0x136   :  { %1596 = vmatprep.mubr.msk.bf16.mxu1 %vm1875_vm0, %v1874_v0 }
 0x13d   :  { %1597 = vmatmul.mubr.bf16.gmra.mrb[60].mxu1 %v2038_v25 }
 0x13e   :  { %1600 = vmatprep.mubr.msk.bf16.mxu1 %vm1875_vm0, %v1874_v0 }
 0x145   :  { %1601 = vmatmul.mubr.bf16.gmra.mrb[64].mxu1 %v344_v44 }
 0x146   :  { %1604 = vmatprep.mubr.msk.bf16.mxu1 %vm1875_vm0, %v1874_v0 }
 0x14d   :  { %1605 = vmatmul.mubr.bf16.gmra.mrb[68].mxu1 %v345_v63 }
 0x14e   :  { %1608 = vmatprep.mubr.msk.bf16.mxu1 %vm1875_vm0, %v1874_v0 }
 0x155   :  { %1609 = vmatmul.mubr.bf16.gmra.mrb[72].mxu1 %v346_v19 }
 0x156   :  { %1676 = vmatprep.mubr.msk.bf16.mxu1 %vm1875_vm0, %v1874_v0 }
 0x1c8   :  { %v450_v23 = vpop.f32.mrb[24].mxu1 }
 0x1c9   :  { %v451_v24 = vadd.f32 %v2079_v7, %v450_v23  ;;  %v1562_v25 = vpop.f32.mrb[25].mxu1 }
 0x1ca   :  { %v453_v26 = vpop.f32.mrb[26].mxu1 }
 0x1cb   :  { %v454_v27 = vadd.f32 %v2079_v7, %v453_v26  ;;  %v1563_v29 = vpop.f32.mrb[27].mxu1  ;;  %v553_v30 = vmax.f32 %v451_v24, 0.0 }
 0x1cd   :  { %v554_v31 = vmax.f32 %v454_v27, 0.0 }
 0x1cf   :  { %v579_v32 = vpack.c.bf16 %v554_v31, %v553_v30 }
 0x1d0   :  { %v458_v33 = vpop.f32.mrb[28].mxu1 }
 0x1d1   :  { %v459_v34 = vadd.f32 %v2079_v7, %v458_v33  ;;  %v1566_v35 = vpop.f32.mrb[29].mxu1  ;;  %1621 = vmatmul.mubr.msk.bf16.vlgmr.msra.gmra.mrb[28].mxu0 %vm629_vm3, %v579_v32 }
 0x1d2   :  { %v461_v36 = vpop.f32.mrb[30].mxu1  ;;  %1624 = vmatprep.mubr.msk.bf16.mxu0 %vm1875_vm0, %v1874_v0 }
 0x1d3   :  { %v462_v37 = vadd.f32 %v2079_v7, %v461_v36  ;;  %v1567_v38 = vpop.f32.mrb[31].mxu1  ;;  %v555_v39 = vmax.f32 %v459_v34, 0.0 }
 0x1d5   :  { %v556_v40 = vmax.f32 %v462_v37, 0.0 }
 0x1d7   :  { %v580_v41 = vpack.c.bf16 %v556_v40, %v555_v39 }
 0x1d8   :  { %v466_v42 = vpop.f32.mrb[32].mxu1 }
 0x1d9   :  { %v467_v43 = vadd.f32 %v2079_v7, %v466_v42  ;;  %v1570_v44 = vpop.f32.mrb[33].mxu1  ;;  %1625 = vmatmul.mubr.msk.bf16.gmra.mrb[32].mxu0 %vm629_vm3, %v580_v41 }
 0x1da   :  { %v469_v45 = vpop.f32.mrb[34].mxu1  ;;  %1628 = vmatprep.mubr.msk.bf16.mxu0 %vm1875_vm0, %v1874_v0 }
 0x1db   :  { %v470_v46 = vadd.f32 %v2079_v7, %v469_v45  ;;  %v1571_v47 = vpop.f32.mrb[35].mxu1  ;;  %v557_v48 = vmax.f32 %v467_v43, 0.0 }
 0x1dd   :  { %v558_v49 = vmax.f32 %v470_v46, 0.0 }
 0x1df   :  { %v581_v50 = vpack.c.bf16 %v558_v49, %v557_v48 }
 0x1e0   :  { %v474_v51 = vpop.f32.mrb[36].mxu1 }
 0x1e1   :  { %v475_v53 = vadd.f32 %v2079_v7, %v474_v51  ;;  %v1574_v54 = vpop.f32.mrb[37].mxu1  ;;  %1629 = vmatmul.mubr.msk.bf16.gmra.mrb[36].mxu0 %vm629_vm3, %v581_v50 }
 0x1e2   :  { %v477_v55 = vpop.f32.mrb[38].mxu1  ;;  %1632 = vmatprep.mubr.msk.bf16.mxu0 %vm1875_vm0, %v1874_v0 }
 0x1e3   :  { %v478_v56 = vadd.f32 %v2079_v7, %v477_v55  ;;  %v1575_v57 = vpop.f32.mrb[39].mxu1  ;;  %v559_v58 = vmax.f32 %v475_v53, 0.0 }
 0x1e5   :  { %v560_v59 = vmax.f32 %v478_v56, 0.0 }
 0x1e7   :  { %v582_v60 = vpack.c.bf16 %v560_v59, %v559_v58 }
 0x1e8   :  { %v482_v61 = vpop.f32.mrb[40].mxu1 }
 0x1e9   :  { %v483_v62 = vadd.f32 %v2079_v7, %v482_v61  ;;  %v1578_v63 = vpop.f32.mrb[41].mxu1  ;;  %1633 = vmatmul.mubr.msk.bf16.gmra.mrb[40].mxu0 %vm629_vm3, %v582_v60 }
 0x1ea   :  { %v485_v1 = vpop.f32.mrb[42].mxu1  ;;  %1636 = vmatprep.mubr.msk.bf16.mxu0 %vm1875_vm0, %v1874_v0 }
 0x1eb   :  { %v486_v2 = vadd.f32 %v2079_v7, %v485_v1  ;;  %v1579_v3 = vpop.f32.mrb[43].mxu1  ;;  %v561_v4 = vmax.f32 %v483_v62, 0.0 }
 0x1ed   :  { %v562_v5 = vmax.f32 %v486_v2, 0.0 }
 0x1ef   :  { %v583_v6 = vpack.c.bf16 %v562_v5, %v561_v4 }
 0x1f0   :  { %v490_v8 = vpop.f32.mrb[44].mxu1 }
 0x1f1   :  { %v491_v9 = vadd.f32 %v2079_v7, %v490_v8  ;;  %v1582_v10 = vpop.f32.mrb[45].mxu1  ;;  %1637 = vmatmul.mubr.msk.bf16.gmra.mrb[44].mxu0 %vm629_vm3, %v583_v6 }
 0x1f2   :  { %v493_v11 = vpop.f32.mrb[46].mxu1  ;;  %1640 = vmatprep.mubr.msk.bf16.mxu0 %vm1875_vm0, %v1874_v0 }
 0x1f3   :  { %v494_v12 = vadd.f32 %v2079_v7, %v493_v11  ;;  %v1583_v13 = vpop.f32.mrb[47].mxu1  ;;  %v563_v14 = vmax.f32 %v491_v9, 0.0 }
 0x1f5   :  { %v564_v15 = vmax.f32 %v494_v12, 0.0 }
 0x1f7   :  { %v584_v16 = vpack.c.bf16 %v564_v15, %v563_v14 }
 0x1f8   :  { %v498_v17 = vpop.f32.mrb[48].mxu1 }
 0x1f9   :  { %v499_v18 = vadd.f32 %v2079_v7, %v498_v17  ;;  %v1586_v19 = vpop.f32.mrb[49].mxu1  ;;  %1641 = vmatmul.mubr.msk.bf16.gmra.mrb[48].mxu0 %vm629_vm3, %v584_v16 }
 0x1fa   :  { %v501_v20 = vpop.f32.mrb[50].mxu1  ;;  %1644 = vmatprep.mubr.msk.bf16.mxu0 %vm1875_vm0, %v1874_v0  ;;  %v1822_v19 = vld [vmem:[#allocation2 + $0x80] sm:$0xff]  }
 0x1fb   :  { %v502_v21 = vadd.f32 %v2079_v7, %v501_v20  ;;  %v1587_v22 = vpop.f32.mrb[51].mxu1  ;;  %v565_v28 = vmax.f32 %v499_v18, 0.0  ;;  %v1821_v18 = vld [vmem:[#allocation2 + $0x78] sm:$0xff]   ;;  %v2150_v20 = vld [vmem:[%s2328_s2 + $0x2] ss:$0 sm:$0xff] }
 0x1fc   :  { %1729 = vmatpush3.bf16.msra.mxu0 %v1821_v18 }
 0x1fd   :  { %v566_v52 = vmax.f32 %v502_v21, 0.0  ;;  %1730 = vmatprep.subr.bf16.mxu0 %v1874_v0 }
 0x1ff   :  { %v585_v23 = vpack.c.bf16 %v566_v52, %v565_v28 }
 0x200   :  { %v506_v24 = vpop.f32.mrb[52].mxu1  ;;  %1731 = vmatpush3.bf16.msra.mxu0 %v1822_v19 }
 0x201   :  { %v507_v25 = vadd.f32 %v2079_v7, %v506_v24  ;;  %v1590_v26 = vpop.f32.mrb[53].mxu1  ;;  %1645 = vmatmul.mubr.msk.bf16.gmra.mrb[52].mxu0 %vm629_vm3, %v585_v23 }
 0x202   :  { %v509_v27 = vpop.f32.mrb[54].mxu1  ;;  %1648 = vmatprep.mubr.msk.bf16.mxu0 %vm1875_vm0, %v1874_v0 }
 0x203   :  { %v510_v29 = vadd.f32 %v2079_v7, %v509_v27  ;;  %v1591_v30 = vpop.f32.mrb[55].mxu1  ;;  %v567_v31 = vmax.f32 %v507_v25, 0.0 }
 0x205   :  { %v568_v32 = vmax.f32 %v510_v29, 0.0 }
 0x207   :  { %v586_v33 = vpack.c.bf16 %v568_v32, %v567_v31 }
 0x208   :  { %v514_v34 = vpop.f32.mrb[56].mxu1 }
 0x209   :  { %v515_v35 = vadd.f32 %v2079_v7, %v514_v34  ;;  %v1594_v36 = vpop.f32.mrb[57].mxu1  ;;  %1649 = vmatmul.mubr.msk.bf16.gmra.mrb[56].mxu0 %vm629_vm3, %v586_v33 }
 0x20a   :  { %v517_v37 = vpop.f32.mrb[58].mxu1  ;;  %1652 = vmatprep.mubr.msk.bf16.mxu0 %vm1875_vm0, %v1874_v0 }
 0x20b   :  { %v518_v38 = vadd.f32 %v2079_v7, %v517_v37  ;;  %v1595_v39 = vpop.f32.mrb[59].mxu1  ;;  %v569_v40 = vmax.f32 %v515_v35, 0.0 }
 0x20d   :  { %v570_v41 = vmax.f32 %v518_v38, 0.0 }
 0x20f   :  { %v587_v42 = vpack.c.bf16 %v570_v41, %v569_v40 }
 0x210   :  { %v522_v43 = vpop.f32.mrb[60].mxu1 }
 0x211   :  { %v523_v44 = vadd.f32 %v2079_v7, %v522_v43  ;;  %v1598_v45 = vpop.f32.mrb[61].mxu1  ;;  %1653 = vmatmul.mubr.msk.bf16.gmra.mrb[60].mxu0 %vm629_vm3, %v587_v42 }
 0x212   :  { %v525_v46 = vpop.f32.mrb[62].mxu1  ;;  %1656 = vmatprep.mubr.msk.bf16.mxu0 %vm1875_vm0, %v1874_v0 }
 0x213   :  { %v526_v47 = vadd.f32 %v2079_v7, %v525_v46  ;;  %v1599_v48 = vpop.f32.mrb[63].mxu1  ;;  %v571_v49 = vmax.f32 %v523_v44, 0.0 }
 0x215   :  { %v572_v50 = vmax.f32 %v526_v47, 0.0 }
 0x217   :  { %v588_v51 = vpack.c.bf16 %v572_v50, %v571_v49 }
 0x218   :  { %v530_v53 = vpop.f32.mrb[64].mxu1 }
 0x219   :  { %v531_v54 = vadd.f32 %v2079_v7, %v530_v53  ;;  %v1602_v55 = vpop.f32.mrb[65].mxu1  ;;  %1657 = vmatmul.mubr.msk.bf16.gmra.mrb[64].mxu0 %vm629_vm3, %v588_v51 }
 0x21a   :  { %v533_v56 = vpop.f32.mrb[66].mxu1  ;;  %1660 = vmatprep.mubr.msk.bf16.mxu0 %vm1875_vm0, %v1874_v0 }
 0x21b   :  { %v534_v57 = vadd.f32 %v2079_v7, %v533_v56  ;;  %v1603_v58 = vpop.f32.mrb[67].mxu1  ;;  %v573_v59 = vmax.f32 %v531_v54, 0.0 }
 0x21d   :  { %v574_v60 = vmax.f32 %v534_v57, 0.0 }
 0x21f   :  { %v589_v61 = vpack.c.bf16 %v574_v60, %v573_v59 }
 0x220   :  { %v538_v62 = vpop.f32.mrb[68].mxu1 }
 0x221   :  { %v539_v63 = vadd.f32 %v2079_v7, %v538_v62  ;;  %v1606_v1 = vpop.f32.mrb[69].mxu1  ;;  %1661 = vmatmul.mubr.msk.bf16.gmra.mrb[68].mxu0 %vm629_vm3, %v589_v61 }
 0x222   :  { %v541_v2 = vpop.f32.mrb[70].mxu1  ;;  %1664 = vmatprep.mubr.msk.bf16.mxu0 %vm1875_vm0, %v1874_v0 }
 0x223   :  { %v542_v3 = vadd.f32 %v2079_v7, %v541_v2  ;;  %v1607_v4 = vpop.f32.mrb[71].mxu1  ;;  %v575_v5 = vmax.f32 %v539_v63, 0.0 }
 0x225   :  { %v576_v6 = vmax.f32 %v542_v3, 0.0 }
 0x227   :  { %v590_v8 = vpack.c.bf16 %v576_v6, %v575_v5 }
 0x228   :  { %v546_v9 = vpop.f32.mrb[72].mxu1 }
 0x229   :  { %v547_v10 = vadd.f32 %v2079_v7, %v546_v9  ;;  %v1610_v11 = vpop.f32.mrb[73].mxu1  ;;  %1665 = vmatmul.mubr.msk.bf16.gmra.mrb[72].mxu0 %vm629_vm3, %v590_v8 }
 0x22a   :  { %v549_v12 = vpop.f32.mrb[74].mxu1  ;;  %1668 = vmatprep.mubr.msk.bf16.mxu0 %vm1875_vm0, %v1874_v0 }
 0x22b   :  { %v550_v13 = vadd.f32 %v2079_v7, %v549_v12  ;;  %v1611_v14 = vpop.f32.mrb[75].mxu1  ;;  %v577_v15 = vmax.f32 %v547_v10, 0.0 }
 0x22d   :  { %v578_v16 = vmax.f32 %v550_v13, 0.0 }
 0x22f   :  { %v591_v17 = vpack.c.bf16 %v578_v16, %v577_v15 }
 0x231   :  { %1669 = vmatmul.mubr.msk.bf16.gmra.mrb[76].mxu0 %vm629_vm3, %v591_v17 }
 0x232   :  { %1732 = vmatprep.mubr.msk.bf16.mxu0 %vm1875_vm0, %v1874_v0 }
 0x2a4   :  { %v703_v7 = vpop.f32.mrb[28].mxu0 }
 0x2a5   :  { %v704_v21 = vadd.f32 %v2150_v20, %v703_v7  ;;  %v1622_v22 = vpop.f32.mrb[29].mxu0 }
 0x2a6   :  { %v706_v28 = vpop.f32.mrb[30].mxu0 }
 0x2a7   :  { %v707_v52 = vadd.f32 %v2150_v20, %v706_v28  ;;  %v1623_v23 = vpop.f32.mrb[31].mxu0  ;;  %v806_v24 = vmax.f32 %v704_v21, 0.0 }
 0x2a9   :  { %v807_v25 = vmax.f32 %v707_v52, 0.0 }
 0x2ab   :  { %v832_v26 = vpack.c.bf16 %v807_v25, %v806_v24 }
 0x2ac   :  { %v711_v27 = vpop.f32.mrb[32].mxu0 }
 0x2ad   :  { %v712_v29 = vadd.f32 %v2150_v20, %v711_v27  ;;  %v1626_v30 = vpop.f32.mrb[33].mxu0  ;;  %1677 = vmatmul.mubr.msk.bf16.vlgmr.msra.gmra.mrb[76].mxu1 %vm866_vm4, %v832_v26 }
 0x2ae   :  { %v714_v31 = vpop.f32.mrb[34].mxu0  ;;  %1680 = vmatprep.mubr.msk.bf16.mxu1 %vm1875_vm0, %v1874_v0 }
 0x2af   :  { %v715_v32 = vadd.f32 %v2150_v20, %v714_v31  ;;  %v1627_v33 = vpop.f32.mrb[35].mxu0  ;;  %v808_v34 = vmax.f32 %v712_v29, 0.0 }
 0x2b1   :  { %v809_v35 = vmax.f32 %v715_v32, 0.0 }
 0x2b3   :  { %v833_v36 = vpack.c.bf16 %v809_v35, %v808_v34 }
 0x2b4   :  { %v719_v37 = vpop.f32.mrb[36].mxu0 }
 0x2b5   :  { %v720_v38 = vadd.f32 %v2150_v20, %v719_v37  ;;  %v1630_v39 = vpop.f32.mrb[37].mxu0  ;;  %1681 = vmatmul.mubr.msk.bf16.gmra.mrb[80].mxu1 %vm866_vm4, %v833_v36 }
 0x2b6   :  { %v722_v40 = vpop.f32.mrb[38].mxu0  ;;  %1684 = vmatprep.mubr.msk.bf16.mxu1 %vm1875_vm0, %v1874_v0 }
 0x2b7   :  { %v723_v41 = vadd.f32 %v2150_v20, %v722_v40  ;;  %v1631_v42 = vpop.f32.mrb[39].mxu0  ;;  %v810_v43 = vmax.f32 %v720_v38, 0.0 }
 0x2b9   :  { %v811_v44 = vmax.f32 %v723_v41, 0.0 }
 0x2bb   :  { %v834_v45 = vpack.c.bf16 %v811_v44, %v810_v43 }
 0x2bc   :  { %v727_v46 = vpop.f32.mrb[40].mxu0 }
 0x2bd   :  { %v728_v47 = vadd.f32 %v2150_v20, %v727_v46  ;;  %v1634_v48 = vpop.f32.mrb[41].mxu0  ;;  %1685 = vmatmul.mubr.msk.bf16.gmra.mrb[84].mxu1 %vm866_vm4, %v834_v45 }
 0x2be   :  { %v730_v49 = vpop.f32.mrb[42].mxu0  ;;  %1688 = vmatprep.mubr.msk.bf16.mxu1 %vm1875_vm0, %v1874_v0 }
 0x2bf   :  { %v731_v50 = vadd.f32 %v2150_v20, %v730_v49  ;;  %v1635_v51 = vpop.f32.mrb[43].mxu0  ;;  %v812_v53 = vmax.f32 %v728_v47, 0.0 }
 0x2c1   :  { %v813_v54 = vmax.f32 %v731_v50, 0.0 }
 0x2c3   :  { %v835_v55 = vpack.c.bf16 %v813_v54, %v812_v53 }
 0x2c4   :  { %v735_v56 = vpop.f32.mrb[44].mxu0 }
 0x2c5   :  { %v736_v57 = vadd.f32 %v2150_v20, %v735_v56  ;;  %v1638_v58 = vpop.f32.mrb[45].mxu0  ;;  %1689 = vmatmul.mubr.msk.bf16.gmra.mrb[88].mxu1 %vm866_vm4, %v835_v55 }
 0x2c6   :  { %v738_v59 = vpop.f32.mrb[46].mxu0  ;;  %1692 = vmatprep.mubr.msk.bf16.mxu1 %vm1875_vm0, %v1874_v0 }
 0x2c7   :  { %v739_v60 = vadd.f32 %v2150_v20, %v738_v59  ;;  %v1639_v61 = vpop.f32.mrb[47].mxu0  ;;  %v814_v62 = vmax.f32 %v736_v57, 0.0 }
 0x2c9   :  { %v815_v63 = vmax.f32 %v739_v60, 0.0 }
 0x2cb   :  { %v836_v1 = vpack.c.bf16 %v815_v63, %v814_v62 }
 0x2cc   :  { %v743_v2 = vpop.f32.mrb[48].mxu0 }
 0x2cd   :  { %v744_v3 = vadd.f32 %v2150_v20, %v743_v2  ;;  %v1642_v4 = vpop.f32.mrb[49].mxu0  ;;  %1693 = vmatmul.mubr.msk.bf16.gmra.mrb[92].mxu1 %vm866_vm4, %v836_v1 }
 0x2ce   :  { %v746_v5 = vpop.f32.mrb[50].mxu0  ;;  %1696 = vmatprep.mubr.msk.bf16.mxu1 %vm1875_vm0, %v1874_v0 }
 0x2cf   :  { %v747_v6 = vadd.f32 %v2150_v20, %v746_v5  ;;  %v1643_v8 = vpop.f32.mrb[51].mxu0  ;;  %v816_v9 = vmax.f32 %v744_v3, 0.0 }
 0x2d1   :  { %v817_v10 = vmax.f32 %v747_v6, 0.0 }
 0x2d3   :  { %v837_v11 = vpack.c.bf16 %v817_v10, %v816_v9 }
 0x2d4   :  { %v751_v12 = vpop.f32.mrb[52].mxu0 }
 0x2d5   :  { %v752_v13 = vadd.f32 %v2150_v20, %v751_v12  ;;  %v1646_v14 = vpop.f32.mrb[53].mxu0  ;;  %1697 = vmatmul.mubr.msk.bf16.gmra.mrb[96].mxu1 %vm866_vm4, %v837_v11 }
 0x2d6   :  { %v754_v15 = vpop.f32.mrb[54].mxu0  ;;  %1700 = vmatprep.mubr.msk.bf16.mxu1 %vm1875_vm0, %v1874_v0 }
 0x2d7   :  { %v755_v16 = vadd.f32 %v2150_v20, %v754_v15  ;;  %v1647_v17 = vpop.f32.mrb[55].mxu0  ;;  %v818_v18 = vmax.f32 %v752_v13, 0.0  ;;  %v2218_v13 = vld [vmem:[%s2328_s2 + $0x3] ss:$0 sm:$0xff] }
 0x2d9   :  { %v819_v19 = vmax.f32 %v755_v16, 0.0 }
 0x2db   :  { %v838_v7 = vpack.c.bf16 %v819_v19, %v818_v18 }
 0x2dc   :  { %v759_v21 = vpop.f32.mrb[56].mxu0 }
 0x2dd   :  { %v760_v22 = vadd.f32 %v2150_v20, %v759_v21  ;;  %v1650_v28 = vpop.f32.mrb[57].mxu0  ;;  %1701 = vmatmul.mubr.msk.bf16.gmra.mrb[100].mxu1 %vm866_vm4, %v838_v7 }
 0x2de   :  { %v762_v52 = vpop.f32.mrb[58].mxu0  ;;  %1704 = vmatprep.mubr.msk.bf16.mxu1 %vm1875_vm0, %v1874_v0 }
 0x2df   :  { %v763_v23 = vadd.f32 %v2150_v20, %v762_v52  ;;  %v1651_v24 = vpop.f32.mrb[59].mxu0  ;;  %v820_v25 = vmax.f32 %v760_v22, 0.0 }
 0x2e1   :  { %v821_v26 = vmax.f32 %v763_v23, 0.0 }
 0x2e3   :  { %v839_v27 = vpack.c.bf16 %v821_v26, %v820_v25 }
 0x2e4   :  { %v767_v29 = vpop.f32.mrb[60].mxu0 }
 0x2e5   :  { %v768_v30 = vadd.f32 %v2150_v20, %v767_v29  ;;  %v1654_v31 = vpop.f32.mrb[61].mxu0  ;;  %1705 = vmatmul.mubr.msk.bf16.gmra.mrb[104].mxu1 %vm866_vm4, %v839_v27 }
 0x2e6   :  { %v770_v32 = vpop.f32.mrb[62].mxu0  ;;  %1708 = vmatprep.mubr.msk.bf16.mxu1 %vm1875_vm0, %v1874_v0 }
 0x2e7   :  { %v771_v33 = vadd.f32 %v2150_v20, %v770_v32  ;;  %v1655_v34 = vpop.f32.mrb[63].mxu0  ;;  %v822_v35 = vmax.f32 %v768_v30, 0.0 }
 0x2e9   :  { %v823_v36 = vmax.f32 %v771_v33, 0.0 }
 0x2eb   :  { %v840_v37 = vpack.c.bf16 %v823_v36, %v822_v35 }
 0x2ec   :  { %v775_v38 = vpop.f32.mrb[64].mxu0 }
 0x2ed   :  { %v776_v39 = vadd.f32 %v2150_v20, %v775_v38  ;;  %v1658_v40 = vpop.f32.mrb[65].mxu0  ;;  %1709 = vmatmul.mubr.msk.bf16.gmra.mrb[108].mxu1 %vm866_vm4, %v840_v37 }
 0x2ee   :  { %v778_v41 = vpop.f32.mrb[66].mxu0  ;;  %1712 = vmatprep.mubr.msk.bf16.mxu1 %vm1875_vm0, %v1874_v0 }
 0x2ef   :  { %v779_v42 = vadd.f32 %v2150_v20, %v778_v41  ;;  %v1659_v43 = vpop.f32.mrb[67].mxu0  ;;  %v824_v44 = vmax.f32 %v776_v39, 0.0 }
 0x2f1   :  { %v825_v45 = vmax.f32 %v779_v42, 0.0 }
 0x2f3   :  { %v841_v46 = vpack.c.bf16 %v825_v45, %v824_v44 }
 0x2f4   :  { %v783_v47 = vpop.f32.mrb[68].mxu0 }
 0x2f5   :  { %v784_v48 = vadd.f32 %v2150_v20, %v783_v47  ;;  %v1662_v49 = vpop.f32.mrb[69].mxu0  ;;  %1713 = vmatmul.mubr.msk.bf16.gmra.mrb[112].mxu1 %vm866_vm4, %v841_v46 }
 0x2f6   :  { %v786_v50 = vpop.f32.mrb[70].mxu0  ;;  %1716 = vmatprep.mubr.msk.bf16.mxu1 %vm1875_vm0, %v1874_v0 }
 0x2f7   :  { %v787_v51 = vadd.f32 %v2150_v20, %v786_v50  ;;  %v1663_v53 = vpop.f32.mrb[71].mxu0  ;;  %v826_v54 = vmax.f32 %v784_v48, 0.0 }
 0x2f9   :  { %v827_v55 = vmax.f32 %v787_v51, 0.0 }
 0x2fb   :  { %v842_v56 = vpack.c.bf16 %v827_v55, %v826_v54 }
 0x2fc   :  { %v791_v57 = vpop.f32.mrb[72].mxu0 }
 0x2fd   :  { %v792_v58 = vadd.f32 %v2150_v20, %v791_v57  ;;  %v1666_v59 = vpop.f32.mrb[73].mxu0  ;;  %1717 = vmatmul.mubr.msk.bf16.gmra.mrb[116].mxu1 %vm866_vm4, %v842_v56 }
 0x2fe   :  { %v794_v60 = vpop.f32.mrb[74].mxu0  ;;  %1720 = vmatprep.mubr.msk.bf16.mxu1 %vm1875_vm0, %v1874_v0 }
 0x2ff   :  { %v795_v61 = vadd.f32 %v2150_v20, %v794_v60  ;;  %v1667_v62 = vpop.f32.mrb[75].mxu0  ;;  %v828_v63 = vmax.f32 %v792_v58, 0.0 }
 0x301   :  { %v829_v1 = vmax.f32 %v795_v61, 0.0 }
 0x303   :  { %v843_v2 = vpack.c.bf16 %v829_v1, %v828_v63 }
 0x304   :  { %v799_v3 = vpop.f32.mrb[76].mxu0 }
 0x305   :  { %v800_v4 = vadd.f32 %v2150_v20, %v799_v3  ;;  %v1670_v5 = vpop.f32.mrb[77].mxu0  ;;  %1721 = vmatmul.mubr.msk.bf16.gmra.mrb[120].mxu1 %vm866_vm4, %v843_v2 }
 0x306   :  { %v802_v6 = vpop.f32.mrb[78].mxu0  ;;  %1724 = vmatprep.mubr.msk.bf16.mxu1 %vm1875_vm0, %v1874_v0 }
 0x307   :  { %v803_v8 = vadd.f32 %v2150_v20, %v802_v6  ;;  %v1671_v9 = vpop.f32.mrb[79].mxu0  ;;  %v830_v10 = vmax.f32 %v800_v4, 0.0 }
 0x309   :  { %v831_v11 = vmax.f32 %v803_v8, 0.0 }
 0x30b   :  { %v844_v12 = vpack.c.bf16 %v831_v11, %v830_v10 }
 0x30d   :  { %1725 = vmatmul.mubr.msk.bf16.gmra.mrb[124].mxu1 %vm866_vm4, %v844_v12 }
 0x380   :  { %v940_v14 = vpop.f32.mrb[76].mxu1 }
 0x381   :  { %v941_v15 = vadd.f32 %v2218_v13, %v940_v14  ;;  %v1678_v16 = vpop.f32.mrb[77].mxu1 }
 0x382   :  { %v943_v17 = vpop.f32.mrb[78].mxu1 }
 0x383   :  { %v944_v18 = vadd.f32 %v2218_v13, %v943_v17  ;;  %v1679_v19 = vpop.f32.mrb[79].mxu1  ;;  %v1043_v20 = vmax.f32 %v941_v15, 0.0 }
 0x385   :  { %v1044_v7 = vmax.f32 %v944_v18, 0.0 }
 0x387   :  { %v1069_v21 = vpack.c.bf16 %v1044_v7, %v1043_v20 }
 0x388   :  { %v948_v22 = vpop.f32.mrb[80].mxu1 }
 0x389   :  { %v949_v28 = vadd.f32 %v2218_v13, %v948_v22  ;;  %v1682_v52 = vpop.f32.mrb[81].mxu1  ;;  %1733 = vmatmul.mubr.msk.bf16.vlgmr.msra.gmra.mrb[80].mxu0 %vm866_vm4, %v1069_v21 }
 0x38a   :  { %v951_v23 = vpop.f32.mrb[82].mxu1  ;;  %1736 = vmatprep.mubr.msk.bf16.mxu0 %vm1875_vm0, %v1874_v0 }
 0x38b   :  { %v952_v24 = vadd.f32 %v2218_v13, %v951_v23  ;;  %v1683_v25 = vpop.f32.mrb[83].mxu1  ;;  %v1045_v26 = vmax.f32 %v949_v28, 0.0 }
 0x38d   :  { %v1046_v27 = vmax.f32 %v952_v24, 0.0 }
 0x38f   :  { %v1070_v29 = vpack.c.bf16 %v1046_v27, %v1045_v26 }
 0x390   :  { %v956_v30 = vpop.f32.mrb[84].mxu1 }
 0x391   :  { %v957_v31 = vadd.f32 %v2218_v13, %v956_v30  ;;  %v1686_v32 = vpop.f32.mrb[85].mxu1  ;;  %1737 = vmatmul.mubr.msk.bf16.gmra.mrb[84].mxu0 %vm866_vm4, %v1070_v29 }
 0x392   :  { %v959_v33 = vpop.f32.mrb[86].mxu1  ;;  %1740 = vmatprep.mubr.msk.bf16.mxu0 %vm1875_vm0, %v1874_v0 }
 0x393   :  { %v960_v34 = vadd.f32 %v2218_v13, %v959_v33  ;;  %v1687_v35 = vpop.f32.mrb[87].mxu1  ;;  %v1047_v36 = vmax.f32 %v957_v31, 0.0 }
 0x395   :  { %v1048_v37 = vmax.f32 %v960_v34, 0.0 }
 0x397   :  { %v1071_v38 = vpack.c.bf16 %v1048_v37, %v1047_v36 }
 0x398   :  { %v964_v39 = vpop.f32.mrb[88].mxu1 }
 0x399   :  { %v965_v40 = vadd.f32 %v2218_v13, %v964_v39  ;;  %v1690_v41 = vpop.f32.mrb[89].mxu1  ;;  %1741 = vmatmul.mubr.msk.bf16.gmra.mrb[88].mxu0 %vm866_vm4, %v1071_v38 }
 0x39a   :  { %v967_v42 = vpop.f32.mrb[90].mxu1  ;;  %1744 = vmatprep.mubr.msk.bf16.mxu0 %vm1875_vm0, %v1874_v0 }
 0x39b   :  { %v968_v43 = vadd.f32 %v2218_v13, %v967_v42  ;;  %v1691_v44 = vpop.f32.mrb[91].mxu1  ;;  %v1049_v45 = vmax.f32 %v965_v40, 0.0 }
 0x39d   :  { %v1050_v46 = vmax.f32 %v968_v43, 0.0 }
 0x39f   :  { %v1072_v47 = vpack.c.bf16 %v1050_v46, %v1049_v45 }
 0x3a0   :  { %v972_v48 = vpop.f32.mrb[92].mxu1 }
 0x3a1   :  { %v973_v49 = vadd.f32 %v2218_v13, %v972_v48  ;;  %v1694_v50 = vpop.f32.mrb[93].mxu1  ;;  %1745 = vmatmul.mubr.msk.bf16.gmra.mrb[92].mxu0 %vm866_vm4, %v1072_v47 }
 0x3a2   :  { %v975_v51 = vpop.f32.mrb[94].mxu1  ;;  %1748 = vmatprep.mubr.msk.bf16.mxu0 %vm1875_vm0, %v1874_v0 }
 0x3a3   :  { %v976_v53 = vadd.f32 %v2218_v13, %v975_v51  ;;  %v1695_v54 = vpop.f32.mrb[95].mxu1  ;;  %v1051_v55 = vmax.f32 %v973_v49, 0.0 }
 0x3a5   :  { %v1052_v56 = vmax.f32 %v976_v53, 0.0 }
 0x3a7   :  { %v1073_v57 = vpack.c.bf16 %v1052_v56, %v1051_v55 }
 0x3a8   :  { %v980_v58 = vpop.f32.mrb[96].mxu1 }
 0x3a9   :  { %v981_v59 = vadd.f32 %v2218_v13, %v980_v58  ;;  %v1698_v60 = vpop.f32.mrb[97].mxu1  ;;  %1749 = vmatmul.mubr.msk.bf16.gmra.mrb[96].mxu0 %vm866_vm4, %v1073_v57 }
 0x3aa   :  { %v983_v61 = vpop.f32.mrb[98].mxu1  ;;  %1752 = vmatprep.mubr.msk.bf16.mxu0 %vm1875_vm0, %v1874_v0 }
 0x3ab   :  { %v984_v62 = vadd.f32 %v2218_v13, %v983_v61  ;;  %v1699_v63 = vpop.f32.mrb[99].mxu1  ;;  %v1053_v1 = vmax.f32 %v981_v59, 0.0 }
 0x3ad   :  { %v1054_v2 = vmax.f32 %v984_v62, 0.0 }
 0x3af   :  { %v1074_v3 = vpack.c.bf16 %v1054_v2, %v1053_v1 }
 0x3b0   :  { %v988_v4 = vpop.f32.mrb[100].mxu1 }
 0x3b1   :  { %v989_v5 = vadd.f32 %v2218_v13, %v988_v4  ;;  %v1702_v6 = vpop.f32.mrb[101].mxu1  ;;  %1753 = vmatmul.mubr.msk.bf16.gmra.mrb[100].mxu0 %vm866_vm4, %v1074_v3 }
 0x3b2   :  { %v991_v8 = vpop.f32.mrb[102].mxu1  ;;  %1756 = vmatprep.mubr.msk.bf16.mxu0 %vm1875_vm0, %v1874_v0 }
 0x3b3   :  { %v992_v9 = vadd.f32 %v2218_v13, %v991_v8  ;;  %v1703_v10 = vpop.f32.mrb[103].mxu1  ;;  %v1055_v11 = vmax.f32 %v989_v5, 0.0  ;;  %v2286_v5 = vld [vmem:[%s2328_s2 + $0x4] ss:$0 sm:$0xff]  ;;  %s1876_s2 = smov [#allocation5]  }
 0x3b4   :  { %s1310_s5 = sshll.u32 %s1876_s2, 4  ;;  %s1311_s5 = int_to_ptr.vmem [resolvable:$true] %s1310_s5 }
 0x3b5   :  { %v1056_v12 = vmax.f32 %v992_v9, 0.0  ;;  %s1845_s6 = scalar_lea.vmem %s1311_s5, 3328  ;;  %p1850_p9 = scmp.lt.s32.totalorder %s1311_s5, %s1311_s5 }
 0x3b6   :  { %p1846_p8 = scmp.ne.s32.totalorder %s1311_s5, %s1845_s6  ;;  %p1851_p10 = scmp.lt.s32.totalorder %s1845_s6, %s1845_s6 }
 0x3b7   :  { %v1075_v14 = vpack.c.bf16 %v1056_v12, %v1055_v11 }
 0x3b8   :  { %v996_v15 = vpop.f32.mrb[104].mxu1  ;;  %p1852_p11 = por %p1851_p10, %p1850_p9 }
 0x3b9   :  { %v997_v16 = vadd.f32 %v2218_v13, %v996_v15  ;;  %v1706_v17 = vpop.f32.mrb[105].mxu1  ;;  %1757 = vmatmul.mubr.msk.bf16.gmra.mrb[104].mxu0 %vm866_vm4, %v1075_v14 }
 0x3ba   :  { %v999_v18 = vpop.f32.mrb[106].mxu1  ;;  %1760 = vmatprep.mubr.msk.bf16.mxu0 %vm1875_vm0, %v1874_v0  ;;  %p1853_p12 = pnand %p1852_p11, %p1846_p8 }
 0x3bb   :  { %v1000_v19 = vadd.f32 %v2218_v13, %v999_v18  ;;  %v1707_v20 = vpop.f32.mrb[107].mxu1  ;;  %v1057_v7 = vmax.f32 %v997_v16, 0.0 }
 0x3bd   :  { %v1058_v21 = vmax.f32 %v1000_v19, 0.0 }
 0x3bf   :  { %v1076_v22 = vpack.c.bf16 %v1058_v21, %v1057_v7 }
 0x3c0   :  { %v1004_v28 = vpop.f32.mrb[108].mxu1 }
 0x3c1   :  { %v1005_v52 = vadd.f32 %v2218_v13, %v1004_v28  ;;  %v1710_v23 = vpop.f32.mrb[109].mxu1  ;;  %1761 = vmatmul.mubr.msk.bf16.gmra.mrb[108].mxu0 %vm866_vm4, %v1076_v22 }
 0x3c2   :  { %v1007_v24 = vpop.f32.mrb[110].mxu1  ;;  %1764 = vmatprep.mubr.msk.bf16.mxu0 %vm1875_vm0, %v1874_v0 }
 0x3c3   :  { %v1008_v25 = vadd.f32 %v2218_v13, %v1007_v24  ;;  %v1711_v26 = vpop.f32.mrb[111].mxu1  ;;  %v1059_v27 = vmax.f32 %v1005_v52, 0.0 }
 0x3c5   :  { %v1060_v29 = vmax.f32 %v1008_v25, 0.0 }
 0x3c7   :  { %v1077_v30 = vpack.c.bf16 %v1060_v29, %v1059_v27 }
 0x3c8   :  { %v1012_v31 = vpop.f32.mrb[112].mxu1 }
 0x3c9   :  { %v1013_v32 = vadd.f32 %v2218_v13, %v1012_v31  ;;  %v1714_v33 = vpop.f32.mrb[113].mxu1  ;;  %1765 = vmatmul.mubr.msk.bf16.gmra.mrb[112].mxu0 %vm866_vm4, %v1077_v30 }
 0x3ca   :  { %v1015_v34 = vpop.f32.mrb[114].mxu1  ;;  %1768 = vmatprep.mubr.msk.bf16.mxu0 %vm1875_vm0, %v1874_v0 }
 0x3cb   :  { %v1016_v35 = vadd.f32 %v2218_v13, %v1015_v34  ;;  %v1715_v36 = vpop.f32.mrb[115].mxu1  ;;  %v1061_v37 = vmax.f32 %v1013_v32, 0.0 }
 0x3cd   :  { %v1062_v38 = vmax.f32 %v1016_v35, 0.0 }
 0x3cf   :  { %v1078_v39 = vpack.c.bf16 %v1062_v38, %v1061_v37 }
 0x3d0   :  { %v1020_v40 = vpop.f32.mrb[116].mxu1 }
 0x3d1   :  { %v1021_v41 = vadd.f32 %v2218_v13, %v1020_v40  ;;  %v1718_v42 = vpop.f32.mrb[117].mxu1  ;;  %1769 = vmatmul.mubr.msk.bf16.gmra.mrb[116].mxu0 %vm866_vm4, %v1078_v39 }
 0x3d2   :  { %v1023_v43 = vpop.f32.mrb[118].mxu1  ;;  %1772 = vmatprep.mubr.msk.bf16.mxu0 %vm1875_vm0, %v1874_v0 }
 0x3d3   :  { %v1024_v44 = vadd.f32 %v2218_v13, %v1023_v43  ;;  %v1719_v45 = vpop.f32.mrb[119].mxu1  ;;  %v1063_v46 = vmax.f32 %v1021_v41, 0.0 }
 0x3d5   :  { %v1064_v47 = vmax.f32 %v1024_v44, 0.0 }
 0x3d7   :  { %v1079_v48 = vpack.c.bf16 %v1064_v47, %v1063_v46 }
 0x3d8   :  { %v1028_v49 = vpop.f32.mrb[120].mxu1 }
 0x3d9   :  { %v1029_v50 = vadd.f32 %v2218_v13, %v1028_v49  ;;  %v1722_v51 = vpop.f32.mrb[121].mxu1  ;;  %1773 = vmatmul.mubr.msk.bf16.gmra.mrb[120].mxu0 %vm866_vm4, %v1079_v48 }
 0x3da   :  { %v1031_v53 = vpop.f32.mrb[122].mxu1  ;;  %1776 = vmatprep.mubr.msk.bf16.mxu0 %vm1875_vm0, %v1874_v0 }
 0x3db   :  { %v1032_v54 = vadd.f32 %v2218_v13, %v1031_v53  ;;  %v1723_v55 = vpop.f32.mrb[123].mxu1  ;;  %v1065_v56 = vmax.f32 %v1029_v50, 0.0 }
 0x3dd   :  { %v1066_v57 = vmax.f32 %v1032_v54, 0.0 }
 0x3df   :  { %v1080_v58 = vpack.c.bf16 %v1066_v57, %v1065_v56 }
 0x3e0   :  { %v1036_v59 = vpop.f32.mrb[124].mxu1 }
 0x3e1   :  { %v1037_v60 = vadd.f32 %v2218_v13, %v1036_v59  ;;  %v1726_v61 = vpop.f32.mrb[125].mxu1  ;;  %1777 = vmatmul.mubr.msk.bf16.gmra.mrb[124].mxu0 %vm866_vm4, %v1080_v58 }
 0x3e2   :  { %v1039_v62 = vpop.f32.mrb[126].mxu1  ;;  %1780 = vmatprep.mubr.msk.bf16.mxu0 %vm1875_vm0, %v1874_v0 }
 0x3e3   :  { %v1040_v63 = vadd.f32 %v2218_v13, %v1039_v62  ;;  %v1727_v1 = vpop.f32.mrb[127].mxu1  ;;  %v1067_v2 = vmax.f32 %v1037_v60, 0.0 }
 0x3e5   :  { %v1068_v3 = vmax.f32 %v1040_v63, 0.0 }
 0x3e7   :  { %v1081_v4 = vpack.c.bf16 %v1068_v3, %v1067_v2 }
 0x3e9   :  { %1781 = vmatmul.mubr.msk.bf16.gmra.mrb[128].mxu0 %vm866_vm4, %v1081_v4 }
 0x45c   :  { %v1176_v6 = vpop.f32.mrb[80].mxu0 }
 0x45d   :  { %v1177_v8 = vadd.f32 %v2286_v5, %v1176_v6  ;;  %v1734_v9 = vpop.f32.mrb[81].mxu0 }
 0x45e   :  { %v1179_v10 = vpop.f32.mrb[82].mxu0 }
 0x45f   :  { %1279 = vst [vmem:[#allocation5] sm:$0xff] %v1177_v8  ;;  %v1180_v0 = vadd.f32 %v2286_v5, %v1179_v10  ;;  %v1735_v13 = vpop.f32.mrb[83].mxu0 }
 0x461   :  { %1280 = vst [vmem:[#allocation5 + $0x8] sm:$0xff] %v1180_v0 }
 0x464   :  { %v1184_v11 = vpop.f32.mrb[84].mxu0 }
 0x465   :  { %v1185_v12 = vadd.f32 %v2286_v5, %v1184_v11  ;;  %v1738_v14 = vpop.f32.mrb[85].mxu0 }
 0x466   :  { %v1187_v15 = vpop.f32.mrb[86].mxu0 }
 0x467   :  { %1281 = vst [vmem:[#allocation5 + $0x10] sm:$0xff] %v1185_v12  ;;  %v1188_v16 = vadd.f32 %v2286_v5, %v1187_v15  ;;  %v1739_v17 = vpop.f32.mrb[87].mxu0 }
 0x469   :  { %1282 = vst [vmem:[#allocation5 + $0x18] sm:$0xff] %v1188_v16 }
 0x46c   :  { %v1192_v18 = vpop.f32.mrb[88].mxu0 }
 0x46d   :  { %v1193_v19 = vadd.f32 %v2286_v5, %v1192_v18  ;;  %v1742_v20 = vpop.f32.mrb[89].mxu0 }
 0x46e   :  { %v1195_v7 = vpop.f32.mrb[90].mxu0 }
 0x46f   :  { %1283 = vst [vmem:[#allocation5 + $0x20] sm:$0xff] %v1193_v19  ;;  %v1196_v21 = vadd.f32 %v2286_v5, %v1195_v7  ;;  %v1743_v22 = vpop.f32.mrb[91].mxu0 }
 0x471   :  { %1284 = vst [vmem:[#allocation5 + $0x28] sm:$0xff] %v1196_v21 }
 0x474   :  { %v1200_v28 = vpop.f32.mrb[92].mxu0 }
 0x475   :  { %v1201_v52 = vadd.f32 %v2286_v5, %v1200_v28  ;;  %v1746_v23 = vpop.f32.mrb[93].mxu0 }
 0x476   :  { %v1203_v24 = vpop.f32.mrb[94].mxu0 }
 0x477   :  { %1285 = vst [vmem:[#allocation5 + $0x30] sm:$0xff] %v1201_v52  ;;  %v1204_v25 = vadd.f32 %v2286_v5, %v1203_v24  ;;  %v1747_v26 = vpop.f32.mrb[95].mxu0 }
 0x479   :  { %1286 = vst [vmem:[#allocation5 + $0x38] sm:$0xff] %v1204_v25 }
 0x47c   :  { %v1208_v27 = vpop.f32.mrb[96].mxu0 }
 0x47d   :  { %v1209_v29 = vadd.f32 %v2286_v5, %v1208_v27  ;;  %v1750_v30 = vpop.f32.mrb[97].mxu0 }
 0x47e   :  { %v1211_v31 = vpop.f32.mrb[98].mxu0 }
 0x47f   :  { %1287 = vst [vmem:[#allocation5 + $0x40] sm:$0xff] %v1209_v29  ;;  %v1212_v32 = vadd.f32 %v2286_v5, %v1211_v31  ;;  %v1751_v33 = vpop.f32.mrb[99].mxu0 }
 0x481   :  { %1288 = vst [vmem:[#allocation5 + $0x48] sm:$0xff] %v1212_v32 }
 0x484   :  { %v1216_v34 = vpop.f32.mrb[100].mxu0 }
 0x485   :  { %v1217_v35 = vadd.f32 %v2286_v5, %v1216_v34  ;;  %v1754_v36 = vpop.f32.mrb[101].mxu0 }
 0x486   :  { %v1219_v37 = vpop.f32.mrb[102].mxu0 }
 0x487   :  { %1289 = vst [vmem:[#allocation5 + $0x50] sm:$0xff] %v1217_v35  ;;  %v1220_v38 = vadd.f32 %v2286_v5, %v1219_v37  ;;  %v1755_v39 = vpop.f32.mrb[103].mxu0 }
 0x489   :  { %1290 = vst [vmem:[#allocation5 + $0x58] sm:$0xff] %v1220_v38 }
 0x48c   :  { %v1224_v40 = vpop.f32.mrb[104].mxu0 }
 0x48d   :  { %v1225_v41 = vadd.f32 %v2286_v5, %v1224_v40  ;;  %v1758_v42 = vpop.f32.mrb[105].mxu0 }
 0x48e   :  { %v1227_v43 = vpop.f32.mrb[106].mxu0 }
 0x48f   :  { %1291 = vst [vmem:[#allocation5 + $0x60] sm:$0xff] %v1225_v41  ;;  %v1228_v44 = vadd.f32 %v2286_v5, %v1227_v43  ;;  %v1759_v45 = vpop.f32.mrb[107].mxu0 }
 0x491   :  { %1292 = vst [vmem:[#allocation5 + $0x68] sm:$0xff] %v1228_v44 }
 0x494   :  { %v1232_v46 = vpop.f32.mrb[108].mxu0 }
 0x495   :  { %v1233_v47 = vadd.f32 %v2286_v5, %v1232_v46  ;;  %v1762_v48 = vpop.f32.mrb[109].mxu0 }
 0x496   :  { %v1235_v49 = vpop.f32.mrb[110].mxu0 }
 0x497   :  { %1293 = vst [vmem:[#allocation5 + $0x70] sm:$0xff] %v1233_v47  ;;  %v1236_v50 = vadd.f32 %v2286_v5, %v1235_v49  ;;  %v1763_v51 = vpop.f32.mrb[111].mxu0 }
 0x499   :  { %1294 = vst [vmem:[#allocation5 + $0x78] sm:$0xff] %v1236_v50 }
 0x49c   :  { %v1240_v53 = vpop.f32.mrb[112].mxu0 }
 0x49d   :  { %v1241_v54 = vadd.f32 %v2286_v5, %v1240_v53  ;;  %v1766_v55 = vpop.f32.mrb[113].mxu0 }
 0x49e   :  { %v1243_v56 = vpop.f32.mrb[114].mxu0 }
 0x49f   :  { %1295 = vst [vmem:[#allocation5 + $0x80] sm:$0xff] %v1241_v54  ;;  %v1244_v57 = vadd.f32 %v2286_v5, %v1243_v56  ;;  %v1767_v58 = vpop.f32.mrb[115].mxu0 }
 0x4a1   :  { %1296 = vst [vmem:[#allocation5 + $0x88] sm:$0xff] %v1244_v57 }
 0x4a4   :  { %v1248_v59 = vpop.f32.mrb[116].mxu0 }
 0x4a5   :  { %v1249_v60 = vadd.f32 %v2286_v5, %v1248_v59  ;;  %v1770_v61 = vpop.f32.mrb[117].mxu0 }
 0x4a6   :  { %v1251_v62 = vpop.f32.mrb[118].mxu0 }
 0x4a7   :  { %1297 = vst [vmem:[#allocation5 + $0x90] sm:$0xff] %v1249_v60  ;;  %v1252_v63 = vadd.f32 %v2286_v5, %v1251_v62  ;;  %v1771_v1 = vpop.f32.mrb[119].mxu0 }
 0x4a9   :  { %1298 = vst [vmem:[#allocation5 + $0x98] sm:$0xff] %v1252_v63 }
 0x4ac   :  { %v1256_v2 = vpop.f32.mrb[120].mxu0 }
 0x4ad   :  { %v1257_v3 = vadd.f32 %v2286_v5, %v1256_v2  ;;  %v1774_v4 = vpop.f32.mrb[121].mxu0 }
 0x4ae   :  { %v1259_v6 = vpop.f32.mrb[122].mxu0 }
 0x4af   :  { %1299 = vst [vmem:[#allocation5 + $0xa0] sm:$0xff] %v1257_v3  ;;  %v1260_v8 = vadd.f32 %v2286_v5, %v1259_v6  ;;  %v1775_v9 = vpop.f32.mrb[123].mxu0 }
 0x4b1   :  { %1300 = vst [vmem:[#allocation5 + $0xa8] sm:$0xff] %v1260_v8 }
 0x4b4   :  { %v1264_v10 = vpop.f32.mrb[124].mxu0 }
 0x4b5   :  { %v1265_v0 = vadd.f32 %v2286_v5, %v1264_v10  ;;  %v1778_v13 = vpop.f32.mrb[125].mxu0 }
 0x4b6   :  { %v1267_v11 = vpop.f32.mrb[126].mxu0 }
 0x4b7   :  { %1301 = vst [vmem:[#allocation5 + $0xb0] sm:$0xff] %v1265_v0  ;;  %v1268_v12 = vadd.f32 %v2286_v5, %v1267_v11  ;;  %v1779_v14 = vpop.f32.mrb[127].mxu0 }
 0x4b9   :  { %1302 = vst [vmem:[#allocation5 + $0xb8] sm:$0xff] %v1268_v12 }
 0x4bc   :  { %v1272_v15 = vpop.f32.mrb[128].mxu0 }
 0x4bd   :  { %v1273_v16 = vadd.f32 %v2286_v5, %v1272_v15  ;;  %v1782_v17 = vpop.f32.mrb[129].mxu0 }
 0x4be   :  { %v1275_v18 = vpop.f32.mrb[130].mxu0 }
 0x4bf   :  { %1303 = vst [vmem:[#allocation5 + $0xc0] sm:$0xff] %v1273_v16  ;;  %v1276_v19 = vadd.f32 %v2286_v5, %v1275_v18  ;;  %v1783_v20 = vpop.f32.mrb[131].mxu0 }
 0x4c1   :  { %1304 = vst [vmem:[#allocation5 + $0xc8] sm:$0xff] %v1276_v19 }
 0x4c2   :  { %1856 = shalt.err (!%p1853_p12)
}
 0x4c3   :  { %s1857_s9 = scalar_lea.hbm %s2329_s3, 3328 }
 0x4c4   :  { %p1858_p13 = scmp.ne.s32.totalorder %s2329_s3, %s1857_s9  ;;  %p1861_p0 = scmp.lt.u32.totalorder %s1857_s9, %s2329_s3 }
 0x4c6   :  { %p1863_p1 = pnand %p1861_p0, %p1858_p13 }
 0x4c8   :  { %1866 = shalt.err (!%p1863_p1)
}
 0x4c9   :  { %s1877_s14 = smov 128   ;;  %s1878_s15 = smov 8  }
 0x4ca   :  { %1316 = dma.vmem_to_hbm [thread:$0]  %s1311_s5, 3328, %s2329_s3, [#allocation4], %s1877_s14, %s1877_s14, %s1878_s15  }
 0x4cb   :  { %1869 = dma.done.wait [#allocation4], 3328  }
 0x4cc   :  { %1870 = vsyncadd [#allocation4], 4294963968 }
 0x4cd   :  { %1320 = vsyncpa [#allocation3], 1 }
 0x4ce   :  { %1321 = vsyncpa [#allocation4], 1 }

</bundles_post_ra>
